<compile_context>
chip_gen: v7x
topology: tpu7x:2x2x1
jax: 0.10.0
libtpu: 0.0.40
codegen_flags: <defaults>
</compile_context>

<pallas_src>
import math

import jax
import jax.numpy as jnp
from jax import lax
from jax.experimental import pallas as pl
from jax.experimental.pallas import tpu as pltpu


def output_layer_forward(x, target, u_w, f_w, f_b, *, block_b=8):
    """Pallas forward pass of OutputLayer.

    x:      (B, L, D) float  activations (batch, seq, features)
    target: (B, Y)    float  0/1 labels
    u_w:    (Y, D)    attention query weights (self.U.weight)
    f_w:    (Y, D)    per-label output weights (self.final.weight)
    f_b:    (Y,)      per-label output bias   (self.final.bias)

    Returns (y, loss): y is (B, Y) logits, loss is scalar mean BCE-with-logits.
    """
    B, L, D = x.shape
    Y = u_w.shape[0]

    BB = block_b
    Yp = -(-Y // 128) * 128          # lane-dense label axis
    Bp = -(-B // BB) * BB            # batch padded to a whole number of blocks

    # ---- wrapper-side padding / packing (one-time XLA ops) ------------------
    # bf16 MXU operands, f32 everything else.
    x_p = jnp.zeros((Bp, L, D), jnp.bfloat16).at[:B].set(x.astype(jnp.bfloat16))
    tgt_p = jnp.zeros((Bp, Yp), jnp.float32).at[:B, :Y].set(
        target.astype(jnp.float32))
    # stacked, pre-transposed weights: columns [0,Yp) = U.weight, [Yp,2Yp) = final.weight
    w_cat = jnp.zeros((D, 2 * Yp), jnp.bfloat16)
    w_cat = w_cat.at[:, :Y].set(u_w.T.astype(jnp.bfloat16))
    w_cat = w_cat.at[:, Yp:Yp + Y].set(f_w.T.astype(jnp.bfloat16))
    fb_p = jnp.zeros((1, Yp), jnp.float32).at[0, :Y].set(f_b.astype(jnp.float32))

    # TODO(synk): for CAML-scale Y (thousands of labels) add a Y grid axis and
    # tile w_cat / fb / targets so the resident weight block fits v7x's 64 MiB
    # VMEM; not needed at these toy shapes.

    def kernel(x_ref, w_ref, fb_ref, tgt_ref, y_ref, loss_ref):
        xb = x_ref[...]                                   # (BB, L, D)   bf16
        w = w_ref[...]                                    # (D, 2*Yp)    bf16
        fb = fb_ref[...]                                  # (1, Yp)      f32
        tgt = tgt_ref[...]                                # (BB, Yp)     f32

        # Single fused MXU matmul for both D-contractions (scores and per-label
        # projections), f32 accumulation.
        x2 = xb.reshape(BB * L, D)
        s2 = jnp.dot(x2, w, preferred_element_type=jnp.float32)   # (BB*L, 2Yp)
        s_all = s2.reshape(BB, L, 2 * Yp)
        scores = s_all[:, :, :Yp]                         # (BB, L, Yp)
        fx = s_all[:, :, Yp:]                             # (BB, L, Yp)

        # Softmax over the sequence axis fused with the weighted sum over L
        # (the (Y, D) context matrix `m` is never materialized).
        smax = jnp.max(scores, axis=1, keepdims=True)     # (BB, 1, Yp)
        e = jnp.exp(scores - smax)                        # (BB, L, Yp)
        den = jnp.sum(e, axis=1)                          # (BB, Yp)
        num = jnp.sum(e * fx, axis=1)                     # (BB, Yp)
        logits = num * pl.reciprocal(den) + fb            # (BB, Yp)
        y_ref[...] = logits.astype(y_ref.dtype)

        # Stable elementwise BCE-with-logits (log1p form written with
        # guaranteed-lowerable ops).  Padded labels / padded batch rows are
        # sliced away in the wrapper before taking the mean.
        per = (jnp.maximum(logits, 0.0) - logits * tgt
               + jnp.log(1.0 + jnp.exp(-jnp.abs(logits))))
        loss_ref[...] = per.astype(loss_ref.dtype)

    grid = (Bp // BB,)

    flops = 4 * Bp * L * D * Yp + 10 * Bp * L * Yp
    transcendentals = Bp * L * Yp + 2 * Bp * Yp
    bytes_accessed = (int(x_p.size) + int(w_cat.size)) * 2 + \
        (int(tgt_p.size) + int(fb_p.size) + 2 * Bp * Yp) * 4

    y_pad, per_pad = pl.pallas_call(
        kernel,
        out_shape=(
            jax.ShapeDtypeStruct((Bp, Yp), jnp.float32),   # logits
            jax.ShapeDtypeStruct((Bp, Yp), jnp.float32),   # per-element BCE
        ),
        grid_spec=pltpu.PrefetchScalarGridSpec(
            num_scalar_prefetch=0,
            grid=grid,
            in_specs=[
                pl.BlockSpec((BB, L, D), lambda b: (b, 0, 0)),   # x rows
                pl.BlockSpec((D, 2 * Yp), lambda b: (0, 0)),     # [U; final] weights
                pl.BlockSpec((1, Yp), lambda b: (0, 0)),         # final.bias
                pl.BlockSpec((BB, Yp), lambda b: (b, 0)),        # targets
            ],
            out_specs=[
                pl.BlockSpec((BB, Yp), lambda b: (b, 0)),        # logits
                pl.BlockSpec((BB, Yp), lambda b: (b, 0)),        # per-element loss
            ],
        ),
        compiler_params=pltpu.CompilerParams(
            dimension_semantics=("parallel",),          # no cross-step state
            vmem_limit_bytes=32 * 1024 * 1024),         # v5e default is 16 MiB
        cost_estimate=pl.CostEstimate(
            flops=flops,
            transcendentals=transcendentals,
            bytes_accessed=bytes_accessed),
    )(x_p, w_cat, fb_p, tgt_p)

    y = y_pad[:B, :Y]
    loss = jnp.sum(per_pad[:B, :Y]) * (1.0 / float(B * Y))  # mean over real entries
    return y, loss


if __name__ == "__main__":
    # small shapes consistent with the module: batch=2, seq=8, input_size=32, Y=16
    B, L, D, Y = 2, 8, 32, 16

    key = jax.random.PRNGKey(0)
    kx, kt, ku, kf, kb = jax.random.split(key, 5)

    x = jax.random.normal(kx, (B, L, D), dtype=jnp.float32)
    target = (jax.random.uniform(kt, (B, Y)) > 0.5).astype(jnp.float32)

    # deterministic parameter init (xavier_uniform for weights, torch Linear
    # default uniform(-1/sqrt(fan_in), 1/sqrt(fan_in)) for the bias)
    xav = math.sqrt(6.0 / (D + Y))
    u_w = jax.random.uniform(ku, (Y, D), minval=-xav, maxval=xav, dtype=jnp.float32)
    f_w = jax.random.uniform(kf, (Y, D), minval=-xav, maxval=xav, dtype=jnp.float32)
    bnd = 1.0 / math.sqrt(D)
    f_b = jax.random.uniform(kb, (Y,), minval=-bnd, maxval=bnd, dtype=jnp.float32)

    y, loss = output_layer_forward(x, target, u_w, f_w, f_b)
    jax.block_until_ready((y, loss))

    # pure-JAX reference (same bf16 operand rounding as the kernel's MXU path)
    xq = x.astype(jnp.bfloat16).astype(jnp.float32)
    uq = u_w.astype(jnp.bfloat16).astype(jnp.float32)
    fq = f_w.astype(jnp.bfloat16).astype(jnp.float32)
    scores = jnp.einsum('yd,bld->byl', uq, xq, precision=lax.Precision.HIGHEST)
    alpha = jax.nn.softmax(scores, axis=2)
    m = jnp.einsum('byl,bld->byd', alpha, xq, precision=lax.Precision.HIGHEST)
    y_ref = jnp.sum(fq[None] * m, axis=2) + f_b[None]
    per = (jnp.maximum(y_ref, 0.0) - y_ref * target
           + jnp.log(1.0 + jnp.exp(-jnp.abs(y_ref))))
    loss_ref = jnp.mean(per)

    assert jnp.allclose(y, y_ref, atol=1e-3, rtol=1e-3), "logits mismatch"
    assert jnp.allclose(loss, loss_ref, atol=1e-3, rtol=1e-3), "loss mismatch"

    print("KERNEL_OK")
</pallas_src>

<mosaic_0001>
module attributes {stable_mosaic.version = 11 : i64} {
  func.func @kernel(%arg0: i32, %arg1: memref<8x8x32xbf16, #tpu.memory_space<vmem>>, %arg2: memref<32x256xbf16, #tpu.memory_space<vmem>>, %arg3: memref<1x128xf32, #tpu.memory_space<vmem>>, %arg4: memref<8x128xf32, #tpu.memory_space<vmem>>, %arg5: memref<8x128xf32, #tpu.memory_space<vmem>>, %arg6: memref<8x128xf32, #tpu.memory_space<vmem>>) attributes {dimension_semantics = [#tpu.dimension_semantics<parallel>], iteration_bounds = array<i64: 1>, scalar_prefetch = 0 : i64, scratch_operands = 0 : i64, tpu.core_type = #tpu.core_type<tc>, window_params = [{transform_indices = @transform_0, window_bounds = array<i64: 8, 8, 32>}, {pipeline_mode = #tpu.pipeline_mode<synchronous>, transform_indices = @transform_1, window_bounds = array<i64: 32, 256>}, {pipeline_mode = #tpu.pipeline_mode<synchronous>, transform_indices = @transform_2, window_bounds = array<i64: 1, 128>}, {transform_indices = @transform_3, window_bounds = array<i64: 8, 128>}, {transform_indices = @transform_4, window_bounds = array<i64: 8, 128>}, {transform_indices = @transform_5, window_bounds = array<i64: 8, 128>}]} {
    %c0 = arith.constant 0 : index
    %c0_0 = arith.constant 0 : index
    %c0_1 = arith.constant 0 : index
    %0 = vector.load %arg1[%c0, %c0_0, %c0_1] : memref<8x8x32xbf16, #tpu.memory_space<vmem>>, vector<8x8x32xbf16>
    %c0_2 = arith.constant 0 : index
    %c0_3 = arith.constant 0 : index
    %1 = vector.load %arg2[%c0_2, %c0_3] : memref<32x256xbf16, #tpu.memory_space<vmem>>, vector<32x256xbf16>
    %c0_4 = arith.constant 0 : index
    %c0_5 = arith.constant 0 : index
    %2 = vector.load %arg3[%c0_4, %c0_5] : memref<1x128xf32, #tpu.memory_space<vmem>>, vector<1x128xf32>
    %c0_6 = arith.constant 0 : index
    %c0_7 = arith.constant 0 : index
    %3 = vector.load %arg4[%c0_6, %c0_7] : memref<8x128xf32, #tpu.memory_space<vmem>>, vector<8x128xf32>
    %4 = vector.shape_cast %0 : vector<8x8x32xbf16> to vector<64x32xbf16>
    %cst = arith.constant dense<0.000000e+00> : vector<64x256xf32>
    %5 = tpu.matmul %4, %1, %cst {dimension_numbers = #tpu.dot_dimension_numbers<[1], [0], [0], [1], [0, 0, 1, 1], [], []>} : vector<64x32xbf16>, vector<32x256xbf16>, vector<64x256xf32> -> vector<64x256xf32>
    %6 = vector.shape_cast %5 : vector<64x256xf32> to vector<8x8x256xf32>
    %7 = vector.extract_strided_slice %6 {offsets = [0, 0, 0], sizes = [8, 8, 128], strides = [1, 1, 1]} : vector<8x8x256xf32> to vector<8x8x128xf32>
    %8 = vector.extract_strided_slice %6 {offsets = [0, 0, 128], sizes = [8, 8, 128], strides = [1, 1, 1]} : vector<8x8x256xf32> to vector<8x8x128xf32>
    %cst_8 = arith.constant dense<0xFF800000> : vector<8x128xf32>
    %9 = vector.multi_reduction <maximumf>, %7, %cst_8 [1] : vector<8x8x128xf32> to vector<8x128xf32>
    %10 = vector.shape_cast %9 : vector<8x128xf32> to vector<8x1x128xf32>
    %11 = vector.broadcast %10 : vector<8x1x128xf32> to vector<8x8x128xf32>
    %12 = arith.subf %7, %11 : vector<8x8x128xf32>
    %13 = math.exp %12 : vector<8x8x128xf32>
    %cst_9 = arith.constant dense<0.000000e+00> : vector<8x128xf32>
    %14 = vector.multi_reduction <add>, %13, %cst_9 [1] : vector<8x8x128xf32> to vector<8x128xf32>
    %15 = arith.mulf %13, %8 : vector<8x8x128xf32>
    %cst_10 = arith.constant dense<0.000000e+00> : vector<8x128xf32>
    %16 = vector.multi_reduction <add>, %15, %cst_10 [1] : vector<8x8x128xf32> to vector<8x128xf32>
    %17 = tpu.reciprocal %14 : vector<8x128xf32> -> vector<8x128xf32>
    %18 = arith.mulf %16, %17 : vector<8x128xf32>
    %19 = vector.broadcast %2 : vector<1x128xf32> to vector<8x128xf32>
    %20 = arith.addf %18, %19 : vector<8x128xf32>
    %c0_11 = arith.constant 0 : index
    %c0_12 = arith.constant 0 : index
    %21 = vector.load %arg5[%c0_11, %c0_12] : memref<8x128xf32, #tpu.memory_space<vmem>>, vector<8x128xf32>
    tpu.vector_store %arg5[%c0_11, %c0_12], %20 {strides = array<i32>} : memref<8x128xf32, #tpu.memory_space<vmem>>, vector<8x128xf32>,
    %cst_13 = arith.constant 0.000000e+00 : f32
    %22 = vector.broadcast %cst_13 : f32 to vector<8x128xf32>
    %23 = arith.maximumf %20, %22 : vector<8x128xf32>
    %24 = arith.mulf %20, %3 : vector<8x128xf32>
    %25 = arith.subf %23, %24 : vector<8x128xf32>
    %26 = math.absf %20 : vector<8x128xf32>
    %cst_14 = arith.constant 0.000000e+00 : f32
    %27 = vector.broadcast %cst_14 : f32 to vector<8x128xf32>
    %28 = arith.subf %27, %26 : vector<8x128xf32>
    %29 = math.exp %28 : vector<8x128xf32>
    %cst_15 = arith.constant 1.000000e+00 : f32
    %30 = vector.broadcast %cst_15 : f32 to vector<8x128xf32>
    %31 = arith.addf %30, %29 : vector<8x128xf32>
    %32 = math.log %31 : vector<8x128xf32>
    %33 = arith.addf %25, %32 : vector<8x128xf32>
    %c0_16 = arith.constant 0 : index
    %c0_17 = arith.constant 0 : index
    %34 = vector.load %arg6[%c0_16, %c0_17] : memref<8x128xf32, #tpu.memory_space<vmem>>, vector<8x128xf32>
    tpu.vector_store %arg6[%c0_16, %c0_17], %33 {strides = array<i32>} : memref<8x128xf32, #tpu.memory_space<vmem>>, vector<8x128xf32>,
    return
  }
  func.func @transform_0(%arg0: i32) -> (i32, i32, i32) {
    %c0_i32 = arith.constant 0 : i32
    %c0_i32_0 = arith.constant 0 : i32
    %c0_i32_1 = arith.constant 0 : i32
    return %arg0, %c0_i32, %c0_i32_0 : i32, i32, i32
  }
  func.func @transform_1(%arg0: i32) -> (i32, i32) {
    %c0_i32 = arith.constant 0 : i32
    %c0_i32_0 = arith.constant 0 : i32
    %c0_i32_1 = arith.constant 0 : i32
    return %c0_i32, %c0_i32_0 : i32, i32
  }
  func.func @transform_2(%arg0: i32) -> (i32, i32) {
    %c0_i32 = arith.constant 0 : i32
    %c0_i32_0 = arith.constant 0 : i32
    %c0_i32_1 = arith.constant 0 : i32
    return %c0_i32, %c0_i32_0 : i32, i32
  }
  func.func @transform_3(%arg0: i32) -> (i32, i32) {
    %c0_i32 = arith.constant 0 : i32
    %c0_i32_0 = arith.constant 0 : i32
    return %arg0, %c0_i32 : i32, i32
  }
  func.func @transform_4(%arg0: i32) -> (i32, i32) {
    %c0_i32 = arith.constant 0 : i32
    %c0_i32_0 = arith.constant 0 : i32
    return %arg0, %c0_i32 : i32, i32
  }
  func.func @transform_5(%arg0: i32) -> (i32, i32) {
    %c0_i32 = arith.constant 0 : i32
    %c0_i32_0 = arith.constant 0 : i32
    return %arg0, %c0_i32 : i32, i32
  }
}

</mosaic_0001>

<bundles_post_ra>
// kernel: tpu_custom_call.1
= control target key start
LH: loop header
LB: loop body
LE: loop exit
PB: predicated region body
PF: predicated region fallthrough
CT: control target
= control target key end

     0   :  { %11 = vsyncpa [#allocation3], 0  ;;  %s980_s0 = inlined_call_operand.hbm [shape: bf16[8,8,32], index: 0, kind: input, shape index: {}]   ;;  %s981_s1 = inlined_call_operand.hbm [shape: bf16[32,256], index: 1, kind: input, shape index: {}]   ;;  %s982_s2 = inlined_call_operand.vmem [shape: f32[1,128], index: 2, kind: input, shape index: {}]   ;;  %s983_s3 = inlined_call_operand.vmem [shape: f32[8,128], index: 3, kind: input, shape index: {}]   ;;  %s984_s4 = inlined_call_operand.hbm [shape: f32[8,128], index: 4, kind: output, shape index: {0}]   ;;  %s985_s5 = inlined_call_operand.hbm [shape: f32[8,128], index: 5, kind: output, shape index: {1}]  }
   0x1   :  { %12 = vsyncpa [#allocation6], 0 }
   0x2   :  { %13 = vsyncpa [#allocation4], 0 }
   0x3   :  { %14 = vsyncpa [#allocation9], 0  ;;  %s781_s18 = smov [#allocation2]   ;;  %s685_s22 = scalar_lea.hbm %s980_s0, 512 }
   0x4   :  { %s20_s19 = sshll.u32 %s781_s18, 4  ;;  %p686_p0 = scmp.ne.s32.totalorder %s980_s0, %s685_s22  ;;  %s21_s19 = int_to_ptr.vmem [resolvable:$true] %s20_s19 }
   0x5   :  { %p689_p1 = scmp.lt.u32.totalorder %s685_s22, %s980_s0 }
   0x7   :  { %p691_p2 = pnand %p689_p1, %p686_p0 }
   0x9   :  { %694 = shalt.err (!%p691_p2)
}
   0xa   :  { %s695_s27 = scalar_lea.vmem %s21_s19, 512  ;;  %p700_p4 = scmp.lt.s32.totalorder %s21_s19, %s21_s19 }
   0xb   :  { %p696_p3 = scmp.ne.s32.totalorder %s21_s19, %s695_s27  ;;  %p701_p5 = scmp.lt.s32.totalorder %s695_s27, %s695_s27 }
   0xd   :  { %p702_p6 = por %p701_p5, %p700_p4 }
   0xf   :  { %p703_p7 = pnand %p702_p6, %p696_p3 }
  0x11   :  { %706 = shalt.err (!%p703_p7)
}
  0x12   :  { %s782_s28 = smov 64   ;;  %s783_s29 = smov 4  }
  0x13   :  { %26 = dma.hbm_to_vmem [thread:$0]  %s980_s0, 512, %s21_s19, [#allocation3], %s782_s28, %s782_s28, %s783_s29  }
  0x14   :  { %s784_s7 = smov [#allocation5]   ;;  %s707_s11 = scalar_lea.hbm %s981_s1, 512 }
  0x15   :  { %s32_s8 = sshll.u32 %s784_s7, 4  ;;  %p708_p8 = scmp.ne.s32.totalorder %s981_s1, %s707_s11  ;;  %s33_s8 = int_to_ptr.vmem [resolvable:$true] %s32_s8 }
  0x16   :  { %p711_p9 = scmp.lt.u32.totalorder %s707_s11, %s981_s1 }
  0x18   :  { %p713_p10 = pnand %p711_p9, %p708_p8 }
  0x1a   :  { %716 = shalt.err (!%p713_p10)
}
  0x1b   :  { %s717_s16 = scalar_lea.vmem %s33_s8, 512  ;;  %p722_p12 = scmp.lt.s32.totalorder %s33_s8, %s33_s8 }
  0x1c   :  { %p718_p11 = scmp.ne.s32.totalorder %s33_s8, %s717_s16  ;;  %p723_p13 = scmp.lt.s32.totalorder %s717_s16, %s717_s16 }
  0x1e   :  { %p724_p0 = por %p723_p13, %p722_p12 }
  0x20   :  { %p725_p1 = pnand %p724_p0, %p718_p11 }
  0x22   :  { %728 = shalt.err (!%p725_p1)
}
  0x23   :  { %s785_s0 = smov 128   ;;  %s786_s17 = smov 8  }
  0x24   :  { %38 = dma.hbm_to_vmem [thread:$0]  %s981_s1, 512, %s33_s8, [#allocation6], %s785_s0, %s785_s0, %s786_s17  }
  0x25   :  { %773 = dma.done.wait [#allocation3], 512  }
  0x26   :  { %774 = vsyncadd [#allocation3], 4294966784 }
  0x27   :  { %775 = dma.done.wait [#allocation6], 512  }
  0x28   :  { %776 = vsyncadd [#allocation6], 4294966784  ;;  %v787_v0 = vmov 0   ;;  %v611_v1 = vld [vmem:[#allocation5 + $0x4] ss:$8 sps:$4 sm:$0xff]   ;;  %v618_v6 = vld [vmem:[#allocation2 + $0x10] sm:$0xff]  }
  0x29   :  { %149 = vmatprep.mubr.bf16.mxu0 %v787_v0  ;;  %169 = vmatprep.mubr.bf16.mxu1 %v787_v0  ;;  %v613_v2 = vld [vmem:[#allocation5] ss:$8 sps:$4 sm:$0xff]   ;;  %v614_v3 = vld [vmem:[#allocation5 + $0x14] ss:$8 sps:$4 sm:$0xff]   ;;  %v616_v4 = vld [vmem:[#allocation5 + $0x10] ss:$8 sps:$4 sm:$0xff]  }
  0x2a   :  { %117 = vmatprep.subr.bf16.mxu0 %v611_v1  ;;  %598 = vmatprep.subr.bf16.mxu1 %v611_v1  ;;  %v617_v5 = vld [vmem:[#allocation2] sm:$0xff]   ;;  %vm104_vm0 = vcmask 261120   ;;  %v619_v7 = vld [vmem:[#allocation2 + $0x8] sm:$0xff]   ;;  %v620_v8 = vld [vmem:[#allocation2 + $0x18] sm:$0xff]   ;;  %vm405_vm1 = vcmask 1041409   ;;  %vm408_vm2 = vcmask 1042434  }
  0x2b   :  { %118 = vmatpush1.bf16.msra.mxu0 %v613_v2  ;;  %600 = vmatpush1.bf16.msra.mxu1 %v613_v2  ;;  %vm411_vm3 = vcmask 1043459   ;;  %vm414_vm4 = vcmask 1044484   ;;  %vm417_vm5 = vcmask 1045509   ;;  %vm420_vm6 = vcmask 1046534  }
  0x2c   :  { %119 = vmatprep.subr.bf16.mxu0 %v614_v3  ;;  %599 = vmatprep.subr.bf16.mxu1 %v614_v3  ;;  %vm423_vm7 = vcmask 1047559  }
  0x2f   :  { %120 = vmatpush1.bf16.msra.mxu0 %v616_v4  ;;  %601 = vmatpush1.bf16.msra.mxu1 %v616_v4 }
  0x32   :  { %593 = vmatmul.mubr.msk.bf16.vlgmr.msra.gmra.mrb[0].mxu0 %vm104_vm0, %v617_v5  ;;  %595 = vmatmul.mubr.msk.bf16.vlgmr.msra.gmra.mrb[0].mxu1 %vm104_vm0, %v618_v6 }
  0x33   :  { %159 = vmatprep.mubr.bf16.mxu0 %v787_v0  ;;  %179 = vmatprep.mubr.bf16.mxu1 %v787_v0 }
  0x3a   :  { %594 = vmatmul.mubr.msk.bf16.gmra.mrb[4].mxu0 %vm104_vm0, %v619_v7  ;;  %596 = vmatmul.mubr.msk.bf16.gmra.mrb[4].mxu1 %vm104_vm0, %v620_v8 }
 0x105   :  { %v151_v9 = vpop.f32.mrb[0].mxu0  ;;  %v171_v10 = vpop.f32.mrb[0].mxu1 }
 0x106   :  { %v190_v11 = vrot.slane %v151_v9, 4  ;;  %v214_v12 = vrot.slane %v171_v10, 4  ;;  %v844_v13 = vpop.f32.mrb[1].mxu0  ;;  %v846_v14 = vpop.f32.mrb[1].mxu1 }
 0x107   :  { %v155_v15 = vpop.f32.mrb[2].mxu0  ;;  %v175_v16 = vpop.f32.mrb[2].mxu1 }
 0x108   :  { %v191_v17 = vmax.f32 %v151_v9, %v190_v11  ;;  %v215_v18 = vmax.f32 %v171_v10, %v214_v12  ;;  %v196_v19 = vrot.slane %v155_v15, 4  ;;  %v220_v20 = vrot.slane %v175_v16, 4  ;;  %v848_v21 = vpop.f32.mrb[3].mxu0  ;;  %v850_v22 = vpop.f32.mrb[3].mxu1 }
 0x10a   :  { %v192_v23 = vrot.slane %v191_v17, 2  ;;  %v216_v24 = vrot.slane %v215_v18, 2  ;;  %v197_v25 = vmax.f32 %v155_v15, %v196_v19  ;;  %v221_v26 = vmax.f32 %v175_v16, %v220_v20 }
 0x10c   :  { %v193_v27 = vmax.f32 %v191_v17, %v192_v23  ;;  %v217_v28 = vmax.f32 %v215_v18, %v216_v24  ;;  %v198_v29 = vrot.slane %v197_v25, 2  ;;  %v222_v30 = vrot.slane %v221_v26, 2 }
 0x10d   :  { %v161_v31 = vpop.f32.mrb[4].mxu0  ;;  %v181_v32 = vpop.f32.mrb[4].mxu1 }
 0x10e   :  { %v194_v33 = vrot.slane %v193_v27, 1  ;;  %v218_v34 = vrot.slane %v217_v28, 1  ;;  %v199_v35 = vmax.f32 %v197_v25, %v198_v29  ;;  %v223_v36 = vmax.f32 %v221_v26, %v222_v30  ;;  %v852_v37 = vpop.f32.mrb[5].mxu0  ;;  %v854_v38 = vpop.f32.mrb[5].mxu1 }
 0x10f   :  { %v202_v39 = vrot.slane %v161_v31, 4  ;;  %v226_v40 = vrot.slane %v181_v32, 4  ;;  %v165_v41 = vpop.f32.mrb[6].mxu0  ;;  %v185_v42 = vpop.f32.mrb[6].mxu1 }
 0x110   :  { %v195_v43 = vmax.f32 %v193_v27, %v194_v33  ;;  %v219_v44 = vmax.f32 %v217_v28, %v218_v34  ;;  %v200_v45 = vrot.slane %v199_v35, 1  ;;  %v224_v46 = vrot.slane %v223_v36, 1  ;;  %v856_v47 = vpop.f32.mrb[7].mxu0  ;;  %v858_v48 = vpop.f32.mrb[7].mxu1 }
 0x111   :  { %v203_v49 = vmax.f32 %v161_v31, %v202_v39  ;;  %v227_v50 = vmax.f32 %v181_v32, %v226_v40  ;;  %v208_v51 = vrot.slane %v165_v41, 4  ;;  %v232_v52 = vrot.slane %v185_v42, 4 }
 0x112   :  { %v238_v53 = vsub.f32 %v151_v9, %v195_v43  ;;  %v242_v54 = vsub.f32 %v171_v10, %v219_v44  ;;  %v201_v55 = vmax.f32 %v199_v35, %v200_v45  ;;  %v225_v56 = vmax.f32 %v223_v36, %v224_v46 }
 0x113   :  { %v204_v57 = vrot.slane %v203_v49, 2  ;;  %v228_v58 = vrot.slane %v227_v50, 2  ;;  %v209_v59 = vmax.f32 %v165_v41, %v208_v51  ;;  %v233_v60 = vmax.f32 %v185_v42, %v232_v52 }
 0x114   :  { %v246_v61 = vmul.f32 1.442695, %v238_v53  ;;  %v254_v62 = vmul.f32 1.442695, %v242_v54  ;;  %v239_v63 = vsub.f32 %v155_v15, %v201_v55  ;;  %v243_v0 = vsub.f32 %v175_v16, %v225_v56 }
 0x115   :  { %v205_v1 = vmax.f32 %v203_v49, %v204_v57  ;;  %v229_v2 = vmax.f32 %v227_v50, %v228_v58  ;;  %v210_v3 = vrot.slane %v209_v59, 2  ;;  %v234_v4 = vrot.slane %v233_v60, 2 }
 0x116   :  { %621 = vpow2.f32 %v246_v61  ;;  %v248_v5 = vmul.f32 1.442695, %v239_v63  ;;  %v256_v6 = vmul.f32 1.442695, %v243_v0 }
 0x117   :  { %623 = vpow2.f32 %v254_v62  ;;  %v206_v7 = vrot.slane %v205_v1, 1  ;;  %v230_v8 = vrot.slane %v229_v2, 1  ;;  %v211_v9 = vmax.f32 %v209_v59, %v210_v3 }
 0x118   :  { %625 = vpow2.f32 %v248_v5  ;;  %v235_v10 = vmax.f32 %v233_v60, %v234_v4 }
 0x119   :  { %627 = vpow2.f32 %v256_v6  ;;  %v207_v11 = vmax.f32 %v205_v1, %v206_v7  ;;  %v231_v12 = vmax.f32 %v229_v2, %v230_v8  ;;  %v212_v17 = vrot.slane %v211_v9, 1 }
 0x11a   :  { %v236_v18 = vrot.slane %v235_v10, 1 }
 0x11b   :  { %v240_v15 = vsub.f32 %v161_v31, %v207_v11  ;;  %v244_v16 = vsub.f32 %v181_v32, %v231_v12  ;;  %v213_v19 = vmax.f32 %v211_v9, %v212_v17 }
 0x11c   :  { %v237_v20 = vmax.f32 %v235_v10, %v236_v18 }
 0x11d   :  { %v250_v23 = vmul.f32 1.442695, %v240_v15  ;;  %v258_v24 = vmul.f32 1.442695, %v244_v16  ;;  %v241_v25 = vsub.f32 %v165_v41, %v213_v19 }
 0x11e   :  { %v245_v26 = vsub.f32 %v185_v42, %v237_v20 }
 0x11f   :  { %629 = vpow2.f32 %v250_v23  ;;  %v252_v27 = vmul.f32 1.442695, %v241_v25 }
 0x120   :  { %v622_v28 = vpop.eup %621  ;;  %631 = vpow2.f32 %v258_v24  ;;  %v260_v29 = vmul.f32 1.442695, %v245_v26 }
 0x121   :  { %v624_v30 = vpop.eup %623  ;;  %v262_v33 = vrot.slane %v622_v28, 4  ;;  %v310_v34 = vmul.f32 %v622_v28, %v844_v13  ;;  %633 = vpow2.f32 %v252_v27 }
 0x122   :  { %v626_v35 = vpop.eup %625  ;;  %v286_v36 = vrot.slane %v624_v30, 4  ;;  %v314_v31 = vmul.f32 %v624_v30, %v846_v14  ;;  %635 = vpow2.f32 %v260_v29 }
 0x123   :  { %v628_v32 = vpop.eup %627  ;;  %v263_v39 = vadd.f32 %v622_v28, %v262_v33  ;;  %v318_v40 = vrot.slane %v310_v34, 4  ;;  %v268_v41 = vrot.slane %v626_v35, 4  ;;  %v311_v42 = vmul.f32 %v626_v35, %v848_v21 }
 0x124   :  { %v287_v43 = vadd.f32 %v624_v30, %v286_v36  ;;  %v342_v44 = vrot.slane %v314_v31, 4  ;;  %v292_v45 = vrot.slane %v628_v32, 4  ;;  %v315_v46 = vmul.f32 %v628_v32, %v850_v22 }
 0x125   :  { %v264_v49 = vrot.slane %v263_v39, 2  ;;  %v319_v50 = vadd.f32 %v318_v40, %v310_v34  ;;  %v269_v13 = vadd.f32 %v626_v35, %v268_v41  ;;  %v324_v51 = vrot.slane %v311_v42, 4 }
 0x126   :  { %v288_v52 = vrot.slane %v287_v43, 2  ;;  %v343_v53 = vadd.f32 %v342_v44, %v314_v31  ;;  %v293_v54 = vadd.f32 %v628_v32, %v292_v45  ;;  %v348_v14 = vrot.slane %v315_v46, 4 }
 0x127   :  { %v265_v55 = vadd.f32 %v264_v49, %v263_v39  ;;  %v320_v56 = vrot.slane %v319_v50, 2  ;;  %v270_v57 = vrot.slane %v269_v13, 2  ;;  %v325_v58 = vadd.f32 %v324_v51, %v311_v42 }
 0x128   :  { %v289_v59 = vadd.f32 %v288_v52, %v287_v43  ;;  %v344_v60 = vrot.slane %v343_v53, 2  ;;  %v294_v21 = vrot.slane %v293_v54, 2  ;;  %v349_v61 = vadd.f32 %v348_v14, %v315_v46 }
 0x129   :  { %v630_v62 = vpop.eup %629  ;;  %v266_v63 = vrot.slane %v265_v55, 1  ;;  %v271_v0 = vadd.f32 %v270_v57, %v269_v13  ;;  %v321_v1 = vadd.f32 %v320_v56, %v319_v50  ;;  %v326_v3 = vrot.slane %v325_v58, 2 }
 0x12a   :  { %v632_v22 = vpop.eup %631  ;;  %v290_v2 = vrot.slane %v289_v59, 1  ;;  %v295_v4 = vadd.f32 %v294_v21, %v293_v54  ;;  %v345_v7 = vadd.f32 %v344_v60, %v343_v53  ;;  %v350_v12 = vrot.slane %v349_v61, 2 }
 0x12b   :  { %v634_v5 = vpop.eup %633  ;;  %v267_v6 = vadd.f32 %v266_v63, %v265_v55  ;;  %v272_v8 = vrot.slane %v271_v0, 1  ;;  %v322_v18 = vrot.slane %v321_v1, 1  ;;  %v327_v15 = vadd.f32 %v326_v3, %v325_v58 }
 0x12c   :  { %v636_v9 = vpop.eup %635  ;;  %v291_v10 = vadd.f32 %v290_v2, %v289_v59  ;;  %v296_v11 = vrot.slane %v295_v4, 1  ;;  %v346_v19 = vrot.slane %v345_v7, 1  ;;  %v274_v20 = vrot.slane %v630_v62, 4 }
 0x12d   :  { %637 = vrcp.f32 %v267_v6  ;;  %v273_v17 = vadd.f32 %v272_v8, %v271_v0  ;;  %v312_v23 = vmul.f32 %v630_v62, %v852_v37  ;;  %v351_v24 = vadd.f32 %v350_v12, %v349_v61 }
 0x12e   :  { %639 = vrcp.f32 %v291_v10  ;;  %v297_v16 = vadd.f32 %v296_v11, %v295_v4  ;;  %v298_v25 = vrot.slane %v632_v22, 4  ;;  %v316_v26 = vmul.f32 %v632_v22, %v854_v38 }
 0x12f   :  { %641 = vrcp.f32 %v273_v17  ;;  %v275_v27 = vadd.f32 %v630_v62, %v274_v20  ;;  %v330_v28 = vrot.slane %v312_v23, 4  ;;  %v280_v29 = vrot.slane %v634_v5, 4 }
 0x130   :  { %643 = vrcp.f32 %v297_v16  ;;  %v313_v30 = vmul.f32 %v634_v5, %v856_v47  ;;  %v299_v33 = vadd.f32 %v632_v22, %v298_v25  ;;  %v354_v34 = vrot.slane %v316_v26, 4  ;;  %v871_v47 = vld [vmem:[%s982_s2] ss:$0 sm:$0xff] }
 0x131   :  { %v304_v35 = vrot.slane %v636_v9, 4  ;;  %v317_v36 = vmul.f32 %v636_v9, %v858_v48  ;;  %v328_v31 = vrot.slane %v327_v15, 1  ;;  %v276_v32 = vrot.slane %v275_v27, 2 }
 0x132   :  { %v331_v39 = vadd.f32 %v330_v28, %v312_v23  ;;  %v281_v40 = vadd.f32 %v634_v5, %v280_v29  ;;  %v300_v37 = vrot.slane %v299_v33, 2  ;;  %v352_v42 = vrot.slane %v351_v24, 1 }
 0x133   :  { %v305_v41 = vadd.f32 %v636_v9, %v304_v35  ;;  %v277_v43 = vadd.f32 %v276_v32, %v275_v27  ;;  %v323_v38 = vadd.f32 %v322_v18, %v321_v1  ;;  %v355_v46 = vadd.f32 %v354_v34, %v316_v26 }
 0x134   :  { %v282_v44 = vrot.slane %v281_v40, 2  ;;  %v301_v45 = vadd.f32 %v300_v37, %v299_v33  ;;  %v347_v50 = vadd.f32 %v346_v19, %v345_v7  ;;  %v329_v48 = vadd.f32 %v328_v31, %v327_v15 }
 0x135   :  { %v278_v13 = vrot.slane %v277_v43, 1  ;;  %v332_v51 = vrot.slane %v331_v39, 2  ;;  %v306_v55 = vrot.slane %v305_v41, 2  ;;  %v353_v58 = vadd.f32 %v352_v42, %v351_v24 }
 0x136   :  { %v302_v54 = vrot.slane %v301_v45, 1  ;;  %v283_v14 = vadd.f32 %v282_v44, %v281_v40  ;;  %v336_v60 = vrot.slane %v313_v30, 4  ;;  %v356_v0 = vrot.slane %v355_v46, 2 }
 0x137   :  { %v638_v49 = vpop.eup %637  ;;  %v279_v59 = vadd.f32 %v278_v13, %v277_v43  ;;  %v333_v1 = vadd.f32 %v332_v51, %v331_v39  ;;  %v360_v2 = vrot.slane %v317_v36, 4  ;;  %v307_v6 = vadd.f32 %v306_v55, %v305_v41 }
 0x138   :  { %v640_v52 = vpop.eup %639  ;;  %v374_v53 = vmul.f32 %v638_v49, %v323_v38  ;;  %v303_v63 = vadd.f32 %v302_v54, %v301_v45  ;;  %v284_v5 = vrot.slane %v283_v14, 1  ;;  %v337_v7 = vadd.f32 %v336_v60, %v313_v30 }
 0x139   :  { %v642_v56 = vpop.eup %641  ;;  %v378_v57 = vmul.f32 %v640_v52, %v347_v50  ;;  %645 = vrcp.f32 %v279_v59  ;;  %v357_v10 = vadd.f32 %v356_v0, %v355_v46  ;;  %v361_v17 = vadd.f32 %v360_v2, %v317_v36 }
 0x13a   :  { %v644_v21 = vpop.eup %643  ;;  %v874_v61 = vadd.f32 %v871_v47, %v374_v53  ;;  %v375_v62 = vmul.f32 %v642_v56, %v329_v48  ;;  %647 = vrcp.f32 %v303_v63  ;;  %v334_v15 = vrot.slane %v333_v1, 1 }
 0x13b   :  { %v379_v22 = vmul.f32 %v644_v21, %v353_v58  ;;  %v881_v9 = vadd.f32 %v871_v47, %v378_v57  ;;  %v285_v16 = vadd.f32 %v284_v5, %v283_v14  ;;  %v308_v19 = vrot.slane %v307_v6, 1 }
 0x13c   :  { %v467_v3 = vand.u32 2147483647, %v874_v61  ;;  %v878_v4 = vadd.f32 %v871_v47, %v375_v62  ;;  %v338_v24 = vrot.slane %v337_v7, 2  ;;  %v358_v26 = vrot.slane %v357_v10, 1 }
 0x13d   :  { %v886_v23 = vadd.f32 %v871_v47, %v379_v22  ;;  %v471_v25 = vand.u32 2147483647, %v881_v9  ;;  %v309_v28 = vadd.f32 %v308_v19, %v307_v6  ;;  %v335_v30 = vadd.f32 %v334_v15, %v333_v1  ;;  %v908_v22 = vld [vmem:[%s983_s3] sm:$0xff]  ;;  %s788_s3 = smov [#allocation7]  }
 0x13e   :  { %v475_v8 = vsub.f32 0.0, %v467_v3  ;;  %v404_v11 = vrot.slane %v878_v4, 7  ;;  %v468_v12 = vand.u32 2147483647, %v878_v4  ;;  %v362_v33 = vrot.slane %v361_v17, 2  ;;  %s561_s22 = sshll.u32 %s788_s3, 4  ;;  %s562_s22 = int_to_ptr.vmem [resolvable:$true] %s561_s22 }
 0x13f   :  { %v472_v35 = vand.u32 2147483647, %v886_v23  ;;  %v339_v36 = vadd.f32 %v338_v24, %v337_v7  ;;  %v479_v31 = vsub.f32 0.0, %v471_v25  ;;  %v359_v39 = vadd.f32 %v358_v26, %v357_v10  ;;  %s729_s23 = scalar_lea.vmem %s562_s22, 128  ;;  %p734_p3 = scmp.lt.s32.totalorder %s562_s22, %s562_s22 }
 0x140   :  { %v483_v18 = vmul.f32 1.442695, %v475_v8  ;;  %v476_v20 = vsub.f32 0.0, %v468_v12  ;;  %v406_v29 = vsel %vm405_vm1, %v404_v11, %v874_v61  ;;  %v363_v42 = vadd.f32 %v362_v33, %v361_v17  ;;  %p730_p2 = scmp.ne.s32.totalorder %s562_s22, %s729_s23  ;;  %p735_p4 = scmp.lt.s32.totalorder %s729_s23, %s729_s23 }
 0x141   :  { %v480_v43 = vsub.f32 0.0, %v472_v35  ;;  %v340_v44 = vrot.slane %v339_v36, 1  ;;  %v491_v38 = vmul.f32 1.442695, %v479_v31  ;;  %v436_v2 = vrot.slane %v908_v22, 1 }
 0x142   :  { %649 = vpow2.f32 %v483_v18  ;;  %v485_v27 = vmul.f32 1.442695, %v476_v20  ;;  %v364_v51 = vrot.slane %v363_v42, 1  ;;  %v413_v7 = vrot.slane %v881_v9, 4  ;;  %p736_p5 = por %p735_p4, %p734_p3 }
 0x143   :  { %651 = vrcp.f32 %v285_v16  ;;  %v646_v34 = vpop.eup %645  ;;  %v493_v53 = vmul.f32 1.442695, %v480_v43  ;;  %v341_v54 = vadd.f32 %v340_v44, %v339_v36  ;;  %v416_v11 = vrot.slane %v886_v23, 3 }
 0x144   :  { %653 = vpow2.f32 %v485_v27  ;;  %v376_v32 = vmul.f32 %v646_v34, %v335_v30  ;;  %v648_v40 = vpop.eup %647  ;;  %v365_v21 = vadd.f32 %v364_v51, %v363_v42  ;;  %v428_v20 = vmax.f32 %v878_v4, 0.0  ;;  %p737_p6 = pnand %p736_p5, %p730_p2 }
 0x145   :  { %655 = vrcp.f32 %v309_v28  ;;  %v380_v41 = vmul.f32 %v648_v40, %v359_v39  ;;  %v452_v24 = vmul.f32 %v436_v2, %v878_v4  ;;  %v427_v33 = vmax.f32 %v874_v61, 0.0 }
 0x146   :  { %v893_v37 = vadd.f32 %v871_v47, %v376_v32  ;;  %657 = vpow2.f32 %v491_v38  ;;  %v451_v34 = vmul.f32 %v874_v61, %v908_v22 }
 0x147   :  { %v897_v46 = vadd.f32 %v871_v47, %v380_v41 }
 0x148   :  { %v469_v45 = vand.u32 2147483647, %v893_v37  ;;  %v407_v49 = vrot.slane %v893_v37, 6 }
 0x149   :  { %v473_v13 = vand.u32 2147483647, %v897_v46  ;;  %v419_v17 = vrot.slane %v897_v46, 2 }
 0x14a   :  { %v477_v48 = vsub.f32 0.0, %v469_v45  ;;  %v409_v14 = vsel %vm408_vm2, %v407_v49, %v406_v29 }
 0x14b   :  { %v481_v57 = vsub.f32 0.0, %v473_v13 }
 0x14c   :  { %v650_v50 = vpop.eup %649  ;;  %v487_v56 = vmul.f32 1.442695, %v477_v48 }
 0x14d   :  { %v499_v52 = vadd.f32 1.0, %v650_v50  ;;  %v652_v55 = vpop.eup %651  ;;  %v495_v62 = vmul.f32 1.442695, %v481_v57 }
 0x14e   :  { %v654_v58 = vpop.eup %653  ;;  %v377_v59 = vmul.f32 %v652_v55, %v341_v54 }
 0x14f   :  { %659 = vlog2.f32 %v499_v52  ;;  %v500_v60 = vadd.f32 1.0, %v654_v58  ;;  %v656_v63 = vpop.eup %655 }
 0x150   :  { %661 = vpow2.f32 %v487_v56  ;;  %v903_v0 = vadd.f32 %v871_v47, %v377_v59  ;;  %v381_v1 = vmul.f32 %v656_v63, %v365_v21  ;;  %v658_v19 = vpop.eup %657 }
 0x151   :  { %663 = vpow2.f32 %v493_v53 }
 0x152   :  { %665 = vlog2.f32 %v500_v60  ;;  %v470_v3 = vand.u32 2147483647, %v903_v0  ;;  %v410_v5 = vrot.slane %v903_v0, 5  ;;  %v914_v6 = vadd.f32 %v871_v47, %v381_v1 }
 0x153   :  { %667 = vpow2.f32 %v495_v62 }
 0x154   :  { %v478_v8 = vsub.f32 0.0, %v470_v3  ;;  %v412_v10 = vsel %vm411_vm3, %v410_v5, %v409_v14  ;;  %v422_v15 = vrot.slane %v914_v6, 1  ;;  %v474_v16 = vand.u32 2147483647, %v914_v6 }
 0x155   :  { %v415_v12 = vsel %vm414_vm4, %v413_v7, %v412_v10 }
 0x156   :  { %v489_v18 = vmul.f32 1.442695, %v478_v8  ;;  %v418_v47 = vsel %vm417_vm5, %v416_v11, %v415_v12  ;;  %v482_v28 = vsub.f32 0.0, %v474_v16 }
 0x157   :  { %v421_v25 = vsel %vm420_vm6, %v419_v17, %v418_v47 }
 0x158   :  { %669 = vpow2.f32 %v489_v18  ;;  %v424_v27 = vsel %vm423_vm7, %v422_v15, %v421_v25 }
 0x159   :  { %v660_v26 = vpop.eup %659  ;;  %426 = vst [vmem:[#allocation7] sm:$0xff] %v424_v27 }
 0x15a   :  { %v662_v29 = vpop.eup %661 }
 0x15b   :  { %v664_v30 = vpop.eup %663  ;;  %v501_v35 = vadd.f32 1.0, %v662_v29 }
 0x15c   :  { %740 = shalt.err (!%p737_p6)
}
 0x15d   :  { %s741_s26 = scalar_lea.hbm %s984_s4, 128 }
 0x15e   :  { %p742_p7 = scmp.ne.s32.totalorder %s984_s4, %s741_s26  ;;  %p745_p8 = scmp.lt.u32.totalorder %s741_s26, %s984_s4 }
 0x160   :  { %p747_p9 = pnand %p745_p8, %p742_p7 }
 0x162   :  { %750 = shalt.err (!%p747_p9)
}
 0x163   :  { %564 = dma.vmem_to_hbm [thread:$0]  %s562_s22, 128, %s984_s4, [#allocation4]   ;;  %v497_v61 = vmul.f32 1.442695, %v482_v28  ;;  %v666_v4 = vpop.eup %665  ;;  %v460_v36 = vsub.f32 %v428_v20, %v452_v24  ;;  %671 = vlog2.f32 %v501_v35  ;;  %v503_v31 = vadd.f32 1.0, %v658_v19 }
 0x164   :  { %v508_v32 = vmul.f32 0.6931472, %v660_v26  ;;  %v510_v39 = vmul.f32 0.6931472, %v666_v4  ;;  %v668_v40 = vpop.eup %667  ;;  %v504_v41 = vadd.f32 1.0, %v664_v30  ;;  %v459_v42 = vsub.f32 %v427_v33, %v451_v34  ;;  %s789_s4 = smov [#allocation8]  }
 0x165   :  { %673 = vpow2.f32 %v497_v61  ;;  %v505_v43 = vadd.f32 1.0, %v668_v40  ;;  %v437_v38 = vrot.slane %v908_v22, 2  ;;  %v670_v50 = vpop.eup %669  ;;  %v429_v13 = vmax.f32 %v893_v37, 0.0  ;;  %s571_s8 = sshll.u32 %s789_s4, 4  ;;  %s572_s8 = int_to_ptr.vmem [resolvable:$true] %s571_s8 }
 0x166   :  { %v524_v44 = vadd.f32 %v510_v39, %v460_v36  ;;  %675 = vlog2.f32 %v503_v31  ;;  %v523_v45 = vadd.f32 %v508_v32, %v459_v42  ;;  %v502_v52 = vadd.f32 1.0, %v670_v50  ;;  %s751_s9 = scalar_lea.vmem %s572_s8, 128  ;;  %p756_p11 = scmp.lt.s32.totalorder %s572_s8, %s572_s8 }
 0x167   :  { %677 = vlog2.f32 %v504_v41  ;;  %v453_v51 = vmul.f32 %v437_v38, %v893_v37  ;;  %v439_v55 = vrot.slane %v908_v22, 4  ;;  %v438_v57 = vrot.slane %v908_v22, 3  ;;  %p752_p10 = scmp.ne.s32.totalorder %s572_s8, %s751_s9  ;;  %p757_p12 = scmp.lt.s32.totalorder %s751_s9, %s751_s9 }
 0x168   :  { %v539_v49 = vrot.slane %v524_v44, 7  ;;  %679 = vlog2.f32 %v505_v43  ;;  %v440_v58 = vrot.slane %v908_v22, 5  ;;  %v441_v60 = vrot.slane %v908_v22, 6 }
 0x169   :  { %681 = vlog2.f32 %v502_v52  ;;  %v461_v14 = vsub.f32 %v429_v13, %v453_v51  ;;  %v431_v37 = vmax.f32 %v881_v9, 0.0  ;;  %v442_v1 = vrot.slane %v908_v22, 7  ;;  %p758_p13 = por %p757_p12, %p756_p11 }
 0x16a   :  { %v540_v48 = vsel %vm405_vm1, %v539_v49, %v523_v45  ;;  %v455_v2 = vmul.f32 %v439_v55, %v881_v9  ;;  %v430_v7 = vmax.f32 %v903_v0, 0.0  ;;  %v454_v8 = vmul.f32 %v438_v57, %v903_v0 }
 0x16b   :  { %v432_v10 = vmax.f32 %v886_v23, 0.0  ;;  %v456_v11 = vmul.f32 %v440_v58, %v886_v23  ;;  %v433_v12 = vmax.f32 %v897_v46, 0.0  ;;  %v457_v17 = vmul.f32 %v441_v60, %v897_v46  ;;  %p759_p0 = pnand %p758_p13, %p752_p10 }
 0x16c   :  { %v463_v9 = vsub.f32 %v431_v37, %v455_v2  ;;  %v462_v19 = vsub.f32 %v430_v7, %v454_v8  ;;  %v434_v0 = vmax.f32 %v914_v6, 0.0  ;;  %v458_v25 = vmul.f32 %v442_v1, %v914_v6 }
 0x16d   :  { %v672_v53 = vpop.eup %671  ;;  %v464_v20 = vsub.f32 %v432_v10, %v456_v11  ;;  %v465_v26 = vsub.f32 %v433_v12, %v457_v17 }
 0x16e   :  { %v512_v56 = vmul.f32 0.6931472, %v672_v53  ;;  %v466_v33 = vsub.f32 %v434_v0, %v458_v25 }
 0x16f   :  { %v674_v54 = vpop.eup %673 }
 0x170   :  { %v506_v59 = vadd.f32 1.0, %v674_v54  ;;  %v525_v21 = vadd.f32 %v512_v56, %v461_v14  ;;  %v676_v62 = vpop.eup %675 }
 0x171   :  { %v678_v63 = vpop.eup %677  ;;  %v516_v18 = vmul.f32 0.6931472, %v676_v62 }
 0x172   :  { %683 = vlog2.f32 %v506_v59  ;;  %v541_v3 = vrot.slane %v525_v21, 6  ;;  %v680_v5 = vpop.eup %679  ;;  %v518_v22 = vmul.f32 0.6931472, %v678_v63 }
 0x173   :  { %v682_v15 = vpop.eup %681  ;;  %v520_v16 = vmul.f32 0.6931472, %v680_v5  ;;  %v527_v23 = vadd.f32 %v516_v18, %v463_v9 }
 0x174   :  { %v542_v47 = vsel %vm408_vm2, %v541_v3, %v540_v48  ;;  %v514_v24 = vmul.f32 0.6931472, %v682_v15  ;;  %v528_v28 = vadd.f32 %v518_v22, %v464_v20 }
 0x175   :  { %v529_v29 = vadd.f32 %v520_v16, %v465_v26  ;;  %v545_v35 = vrot.slane %v527_v23, 4 }
 0x176   :  { %v526_v27 = vadd.f32 %v514_v24, %v462_v19  ;;  %v547_v4 = vrot.slane %v528_v28, 3 }
 0x177   :  { %v549_v32 = vrot.slane %v529_v29, 2 }
 0x178   :  { %v543_v30 = vrot.slane %v526_v27, 5 }
 0x17a   :  { %v544_v61 = vsel %vm411_vm3, %v543_v30, %v542_v47 }
 0x17b   :  { %v546_v31 = vsel %vm414_vm4, %v545_v35, %v544_v61 }
 0x17c   :  { %v684_v46 = vpop.eup %683  ;;  %v548_v6 = vsel %vm417_vm5, %v547_v4, %v546_v31 }
 0x17d   :  { %v522_v34 = vmul.f32 0.6931472, %v684_v46  ;;  %v550_v39 = vsel %vm420_vm6, %v549_v32, %v548_v6 }
 0x17f   :  { %v530_v36 = vadd.f32 %v522_v34, %v466_v33 }
 0x181   :  { %v551_v40 = vrot.slane %v530_v36, 1 }
 0x183   :  { %v552_v41 = vsel %vm423_vm7, %v551_v40, %v550_v39 }
 0x184   :  { %554 = vst [vmem:[#allocation8] sm:$0xff] %v552_v41 }
 0x185   :  { %762 = shalt.err (!%p759_p0)
}
 0x186   :  { %s763_s12 = scalar_lea.hbm %s985_s5, 128 }
 0x187   :  { %p764_p1 = scmp.ne.s32.totalorder %s985_s5, %s763_s12  ;;  %p767_p2 = scmp.lt.u32.totalorder %s763_s12, %s985_s5 }
 0x189   :  { %p769_p3 = pnand %p767_p2, %p764_p1 }
 0x18b   :  { %772 = shalt.err (!%p769_p3)
}
 0x18c   :  { %574 = dma.vmem_to_hbm [thread:$0]  %s572_s8, 128, %s985_s5, [#allocation9]  }
 0x18d   :  { %777 = dma.done.wait [#allocation4], 128  }
 0x18e   :  { %778 = vsyncadd [#allocation4], 4294967168 }
 0x18f   :  { %779 = dma.done.wait [#allocation9], 128  }
 0x190   :  { %780 = vsyncadd [#allocation9], 4294967168 }
 0x191   :  { %581 = vsyncpa [#allocation3], 1 }
 0x192   :  { %582 = vsyncpa [#allocation6], 1 }
 0x193   :  { %583 = vsyncpa [#allocation4], 1 }
 0x194   :  { %584 = vsyncpa [#allocation9], 1 }

</bundles_post_ra>
